<compile_context>
chip_gen: v7x
topology: tpu7x:2x2x1
jax: 0.10.0
libtpu: 0.0.40
codegen_flags: <defaults>
</compile_context>

<pallas_src>
import functools

import jax
import jax.numpy as jnp
from jax import lax
from jax.experimental import pallas as pl
from jax.experimental.pallas import tpu as pltpu


# ----------------------------------------------------------------------------- kernel
def lstm_kernel(extra_ref,   # (S+1, Bp, 8*Hp)  per-step additive terms (x-proj + biases), packed
                wrec_ref,    # (2*Hp, 8*Hp)     fused recurrent weights [[Whh0, Wih1],[0, Whh1]]
                h_out_ref):  # (Bp, 2*Hp)       final packed state [h0[S] | h1[S-1]]
    Sp1, Bp, _ = extra_ref.shape
    Hp2 = wrec_ref.shape[0]                      # 2 * Hp (width of one packed state)

    def pointwise(gates, c):
        # gates: (Bp, 8*Hp) packed [i|f|g|o], each block 2*Hp wide holding both layers.
        # i/f/o columns were pre-scaled by 0.5 at init, so sigmoid(z) == 0.5*tanh(z)+0.5.
        t = jnp.tanh(gates)                      # single wide EUP op over all gates
        s = 0.5 * t + 0.5
        i = s[:, 0 * Hp2:1 * Hp2]
        f = s[:, 1 * Hp2:2 * Hp2]
        g = t[:, 2 * Hp2:3 * Hp2]
        o = s[:, 3 * Hp2:4 * Hp2]
        c_new = f * c + i * g
        h_new = o * jnp.tanh(c_new)
        return h_new, c_new                      # packed (Bp, 2*Hp) each

    # Prologue (t = 0): both initial hidden states are zero, so the recurrent GEMM
    # vanishes; extra[0] has its layer-1 columns zeroed, which leaves (h1, c1) == 0.
    h, c = pointwise(extra_ref[0], jnp.zeros((Bp, Hp2), jnp.float32))

    # Wavefront recurrence: iteration t consumes [h0[t-1] | h1[t-2]] and produces
    # [h0[t] | h1[t-1]] with ONE fused MXU GEMM. Weights are re-read from VMEM each
    # unrolled step (off the critical path) to avoid vreg spills.
    # TODO(synk): park wrec in MXU staging registers across steps via
    # pltpu.matmul_push_rhs / matmul_acc_lhs / matmul_pop to avoid re-pushing the RHS
    # every iteration; kept as jnp.dot for portability/robustness here.
    def step(t, carry):
        h, c = carry
        gates = jnp.dot(h, wrec_ref[...], preferred_element_type=jnp.float32)
        gates = gates + extra_ref[t]
        return pointwise(gates, c)

    h, c = lax.fori_loop(1, Sp1, step, (h, c), unroll=True)
    h_out_ref[...] = h


# ----------------------------------------------------------------------------- wrapper
@functools.partial(jax.jit, static_argnames=("hidden_size",))
def stock_lstm_forward(x, kp, hidden_size=50):
    """x: (batch, seq, input_size) f32  ->  (batch, 1) f32"""
    B, S, I = x.shape
    H = hidden_size
    Hp2 = kp["w_rec"].shape[0]                   # 2 * Hp
    Hp = Hp2 // 2
    Bp = ((B + 7) // 8) * 8                      # pad batch to sublane granule

    # Time-major, batch-padded, with one extra zero timestep at the end: the wavefront
    # epilogue runs one more fused step whose layer-0 half is discarded.
    x_tm = jnp.zeros((S + 1, Bp, I), jnp.float32).at[:S, :B].set(
        jnp.transpose(x, (1, 0, 2)))

    # Hoisted layer-0 input projection + all biases, packed into the interleaved gate
    # layout [i0 i1 f0 f1 g0 g1 o0 o1] with one GEMM over all timesteps.
    # TODO(synk): for input_size == 1 this could be a broadcast-multiply inside the
    # kernel instead of a wrapper GEMM; at this size the HBM round-trip is negligible.
    extra = jnp.einsum("sbi,ig->sbg", x_tm, kp["w_in"]) + kp["b_in"]
    # Zero the layer-1 columns of the t=0 row so the prologue leaves (h1, c1) == 0.
    extra = extra.at[0].multiply(kp["l0_mask"])

    h_packed = pl.pallas_call(
        lstm_kernel,
        out_shape=jax.ShapeDtypeStruct((Bp, Hp2), jnp.float32),
        in_specs=[pl.BlockSpec(memory_space=pltpu.MemorySpace.VMEM)] * 2,
        out_specs=pl.BlockSpec(memory_space=pltpu.MemorySpace.VMEM),
    )(extra, kp["w_rec"])

    # Final FC kept in the (jitted) wrapper: tiny GEMM, avoids a width-1 kernel output.
    h1_last = h_packed[:B, Hp:Hp + H]
    return h1_last @ kp["fc_w"].T + kp["fc_b"]


# ----------------------------------------------------------------------------- params
def init_params(key, input_size=1, hidden_size=50, hidden_pad=64):
    """Deterministic PyTorch-style init: U(-1/sqrt(H), 1/sqrt(H)).

    Returns (raw PyTorch-layout params, kernel-layout params).

    Kernel layout (Hp = hidden_pad):
      * Gate columns packed as [i0 i1 f0 f1 g0 g1 o0 o1] (each sub-block Hp wide),
        with i/f/o columns pre-scaled by 0.5 so one in-kernel tanh implements sigmoid.
      * w_in  (I, 8*Hp):    layer-0 input weights; layer-1 columns are zero.
      * b_in  (1, 8*Hp):    fused biases (b_ih + b_hh) for both layers.
      * w_rec (2*Hp, 8*Hp): block matrix [[Whh0, Wih1],[0, Whh1]] so one GEMM with LHS
        [h0[t-1] | h1[t-2]] yields layer-0 gates for step t and layer-1 gates for
        step t-1 (wavefront fusion).
    """
    H, I, Hp = hidden_size, input_size, hidden_pad
    k = 1.0 / float(H) ** 0.5
    keys = jax.random.split(key, 10)
    u = lambda kk, shape: jax.random.uniform(kk, shape, jnp.float32, -k, k)

    raw = {
        "w_ih_l0": u(keys[0], (4 * H, I)), "w_hh_l0": u(keys[1], (4 * H, H)),
        "b_ih_l0": u(keys[2], (4 * H,)),   "b_hh_l0": u(keys[3], (4 * H,)),
        "w_ih_l1": u(keys[4], (4 * H, H)), "w_hh_l1": u(keys[5], (4 * H, H)),
        "b_ih_l1": u(keys[6], (4 * H,)),   "b_hh_l1": u(keys[7], (4 * H,)),
        "fc_w":    u(keys[8], (1, H)),     "fc_b":    u(keys[9], (1,)),
    }

    scale = (0.5, 0.5, 1.0, 0.5)          # (i, f, g, o): g keeps full scale (true tanh)

    def wblock(w, g, k_pad):
        # w: (4H, K) PyTorch layout -> gate-g block, transposed + scaled + zero-padded.
        blk = (w[g * H:(g + 1) * H, :] * scale[g]).T                 # (K, H)
        return jnp.pad(blk, ((0, k_pad - blk.shape[0]), (0, Hp - H)))

    def bblock(b_ih, b_hh, g):
        b = (b_ih + b_hh)[g * H:(g + 1) * H] * scale[g]
        return jnp.pad(b, (0, Hp - H)).reshape(1, Hp)

    def interleave(l0, l1):
        # lists of 4 per-gate blocks -> columns [i0 i1 f0 f1 g0 g1 o0 o1]
        cols = []
        for g in range(4):
            cols += [l0[g], l1[g]]
        return jnp.concatenate(cols, axis=-1)

    zI = jnp.zeros((I, Hp), jnp.float32)
    zH = jnp.zeros((Hp, Hp), jnp.float32)

    w_in = interleave([wblock(raw["w_ih_l0"], g, I) for g in range(4)], [zI] * 4)
    b_in = interleave([bblock(raw["b_ih_l0"], raw["b_hh_l0"], g) for g in range(4)],
                      [bblock(raw["b_ih_l1"], raw["b_hh_l1"], g) for g in range(4)])
    w_rec = jnp.concatenate([
        interleave([wblock(raw["w_hh_l0"], g, Hp) for g in range(4)],
                   [wblock(raw["w_ih_l1"], g, Hp) for g in range(4)]),
        interleave([zH] * 4,
                   [wblock(raw["w_hh_l1"], g, Hp) for g in range(4)]),
    ], axis=0)                                                       # (2*Hp, 8*Hp)
    l0_mask = interleave([jnp.ones((1, Hp), jnp.float32)] * 4,
                         [jnp.zeros((1, Hp), jnp.float32)] * 4).reshape(-1)  # (8*Hp,)

    kernel_params = {
        "w_in": w_in, "b_in": b_in, "w_rec": w_rec, "l0_mask": l0_mask,
        "fc_w": raw["fc_w"], "fc_b": raw["fc_b"],
    }
    return raw, kernel_params


# ----------------------------------------------------------------------------- reference
def ref_forward(x, raw, hidden_size=50):
    B, S, _ = x.shape
    H = hidden_size

    def layer(inp, w_ih, w_hh, b_ih, b_hh):
        h = jnp.zeros((B, H), jnp.float32)
        c = jnp.zeros((B, H), jnp.float32)
        outs = []
        for t in range(S):
            gates = inp[:, t, :] @ w_ih.T + b_ih + h @ w_hh.T + b_hh
            i = jax.nn.sigmoid(gates[:, 0 * H:1 * H])
            f = jax.nn.sigmoid(gates[:, 1 * H:2 * H])
            g = jnp.tanh(gates[:, 2 * H:3 * H])
            o = jax.nn.sigmoid(gates[:, 3 * H:4 * H])
            c = f * c + i * g
            h = o * jnp.tanh(c)
            outs.append(h)
        return jnp.stack(outs, axis=1)

    out0 = layer(x, raw["w_ih_l0"], raw["w_hh_l0"], raw["b_ih_l0"], raw["b_hh_l0"])
    out1 = layer(out0, raw["w_ih_l1"], raw["w_hh_l1"], raw["b_ih_l1"], raw["b_hh_l1"])
    return out1[:, -1, :] @ raw["fc_w"].T + raw["fc_b"]


# ----------------------------------------------------------------------------- main
if __name__ == "__main__":
    B, S, I, H = 2, 8, 1, 50
    key = jax.random.PRNGKey(0)
    kx, kparam = jax.random.split(key)

    x = jax.random.normal(kx, (B, S, I), dtype=jnp.float32)
    raw, params = init_params(kparam, input_size=I, hidden_size=H, hidden_pad=64)

    out = stock_lstm_forward(x, params, hidden_size=H)
    out = jax.block_until_ready(out)

    ref = ref_forward(x, raw, hidden_size=H)
    assert out.shape == (B, 1), out.shape
    assert jnp.allclose(out, ref, rtol=1e-4, atol=1e-4), (out, ref)

    print("KERNEL_OK")
</pallas_src>

<mosaic_0001>
module attributes {stable_mosaic.version = 11 : i64} {
  func.func @lstm_kernel(%arg0: memref<9x8x512xf32, #tpu.memory_space<vmem>>, %arg1: memref<128x512xf32, #tpu.memory_space<vmem>>, %arg2: memref<8x128xf32, #tpu.memory_space<vmem>>) attributes {dimension_semantics = [], scalar_prefetch = 0 : i64, scratch_operands = 0 : i64, tpu.core_type = #tpu.core_type<tc>} {
    %c0 = arith.constant 0 : index
    %c0_0 = arith.constant 0 : index
    %c0_1 = arith.constant 0 : index
    %0 = vector.load %arg0[%c0, %c0_0, %c0_1] : memref<9x8x512xf32, #tpu.memory_space<vmem>>, vector<1x8x512xf32>
    %1 = vector.shape_cast %0 : vector<1x8x512xf32> to vector<8x512xf32>
    %cst = arith.constant 0.000000e+00 : f32
    %2 = vector.broadcast %cst : f32 to vector<8x128xf32>
    %3 = math.tanh %1 : vector<8x512xf32>
    %cst_2 = arith.constant 5.000000e-01 : f32
    %4 = vector.broadcast %cst_2 : f32 to vector<8x512xf32>
    %5 = arith.mulf %4, %3 : vector<8x512xf32>
    %cst_3 = arith.constant 5.000000e-01 : f32
    %6 = vector.broadcast %cst_3 : f32 to vector<8x512xf32>
    %7 = arith.addf %5, %6 : vector<8x512xf32>
    %8 = vector.extract_strided_slice %7 {offsets = [0, 0], sizes = [8, 128], strides = [1, 1]} : vector<8x512xf32> to vector<8x128xf32>
    %9 = vector.extract_strided_slice %7 {offsets = [0, 128], sizes = [8, 128], strides = [1, 1]} : vector<8x512xf32> to vector<8x128xf32>
    %10 = vector.extract_strided_slice %3 {offsets = [0, 256], sizes = [8, 128], strides = [1, 1]} : vector<8x512xf32> to vector<8x128xf32>
    %11 = vector.extract_strided_slice %7 {offsets = [0, 384], sizes = [8, 128], strides = [1, 1]} : vector<8x512xf32> to vector<8x128xf32>
    %12 = arith.mulf %9, %2 : vector<8x128xf32>
    %13 = arith.mulf %8, %10 : vector<8x128xf32>
    %14 = arith.addf %12, %13 : vector<8x128xf32>
    %15 = math.tanh %14 : vector<8x128xf32>
    %16 = arith.mulf %11, %15 : vector<8x128xf32>
    %c1_i32 = arith.constant 1 : i32
    %c0_4 = arith.constant 0 : index
    %c0_5 = arith.constant 0 : index
    %17 = vector.load %arg1[%c0_4, %c0_5] : memref<128x512xf32, #tpu.memory_space<vmem>>, vector<128x512xf32>
    %cst_6 = arith.constant dense<0.000000e+00> : vector<8x512xf32>
    %18 = tpu.matmul %16, %17, %cst_6 {dimension_numbers = #tpu.dot_dimension_numbers<[1], [0], [0], [1], [0, 0, 1, 1], [], []>} : vector<8x128xf32>, vector<128x512xf32>, vector<8x512xf32> -> vector<8x512xf32>
    %19 = arith.index_cast %c1_i32 : i32 to index
    %c0_7 = arith.constant 0 : index
    %c0_8 = arith.constant 0 : index
    %20 = vector.load %arg0[%19, %c0_7, %c0_8] : memref<9x8x512xf32, #tpu.memory_space<vmem>>, vector<1x8x512xf32>
    %21 = vector.shape_cast %20 : vector<1x8x512xf32> to vector<8x512xf32>
    %22 = arith.addf %18, %21 : vector<8x512xf32>
    %23 = math.tanh %22 : vector<8x512xf32>
    %cst_9 = arith.constant 5.000000e-01 : f32
    %24 = vector.broadcast %cst_9 : f32 to vector<8x512xf32>
    %25 = arith.mulf %24, %23 : vector<8x512xf32>
    %cst_10 = arith.constant 5.000000e-01 : f32
    %26 = vector.broadcast %cst_10 : f32 to vector<8x512xf32>
    %27 = arith.addf %25, %26 : vector<8x512xf32>
    %28 = vector.extract_strided_slice %27 {offsets = [0, 0], sizes = [8, 128], strides = [1, 1]} : vector<8x512xf32> to vector<8x128xf32>
    %29 = vector.extract_strided_slice %27 {offsets = [0, 128], sizes = [8, 128], strides = [1, 1]} : vector<8x512xf32> to vector<8x128xf32>
    %30 = vector.extract_strided_slice %23 {offsets = [0, 256], sizes = [8, 128], strides = [1, 1]} : vector<8x512xf32> to vector<8x128xf32>
    %31 = vector.extract_strided_slice %27 {offsets = [0, 384], sizes = [8, 128], strides = [1, 1]} : vector<8x512xf32> to vector<8x128xf32>
    %32 = arith.mulf %29, %14 : vector<8x128xf32>
    %33 = arith.mulf %28, %30 : vector<8x128xf32>
    %34 = arith.addf %32, %33 : vector<8x128xf32>
    %35 = math.tanh %34 : vector<8x128xf32>
    %36 = arith.mulf %31, %35 : vector<8x128xf32>
    %c2_i32 = arith.constant 2 : i32
    %c0_11 = arith.constant 0 : index
    %c0_12 = arith.constant 0 : index
    %37 = vector.load %arg1[%c0_11, %c0_12] : memref<128x512xf32, #tpu.memory_space<vmem>>, vector<128x512xf32>
    %cst_13 = arith.constant dense<0.000000e+00> : vector<8x512xf32>
    %38 = tpu.matmul %36, %37, %cst_13 {dimension_numbers = #tpu.dot_dimension_numbers<[1], [0], [0], [1], [0, 0, 1, 1], [], []>} : vector<8x128xf32>, vector<128x512xf32>, vector<8x512xf32> -> vector<8x512xf32>
    %39 = arith.index_cast %c2_i32 : i32 to index
    %c0_14 = arith.constant 0 : index
    %c0_15 = arith.constant 0 : index
    %40 = vector.load %arg0[%39, %c0_14, %c0_15] : memref<9x8x512xf32, #tpu.memory_space<vmem>>, vector<1x8x512xf32>
    %41 = vector.shape_cast %40 : vector<1x8x512xf32> to vector<8x512xf32>
    %42 = arith.addf %38, %41 : vector<8x512xf32>
    %43 = math.tanh %42 : vector<8x512xf32>
    %cst_16 = arith.constant 5.000000e-01 : f32
    %44 = vector.broadcast %cst_16 : f32 to vector<8x512xf32>
    %45 = arith.mulf %44, %43 : vector<8x512xf32>
    %cst_17 = arith.constant 5.000000e-01 : f32
    %46 = vector.broadcast %cst_17 : f32 to vector<8x512xf32>
    %47 = arith.addf %45, %46 : vector<8x512xf32>
    %48 = vector.extract_strided_slice %47 {offsets = [0, 0], sizes = [8, 128], strides = [1, 1]} : vector<8x512xf32> to vector<8x128xf32>
    %49 = vector.extract_strided_slice %47 {offsets = [0, 128], sizes = [8, 128], strides = [1, 1]} : vector<8x512xf32> to vector<8x128xf32>
    %50 = vector.extract_strided_slice %43 {offsets = [0, 256], sizes = [8, 128], strides = [1, 1]} : vector<8x512xf32> to vector<8x128xf32>
    %51 = vector.extract_strided_slice %47 {offsets = [0, 384], sizes = [8, 128], strides = [1, 1]} : vector<8x512xf32> to vector<8x128xf32>
    %52 = arith.mulf %49, %34 : vector<8x128xf32>
    %53 = arith.mulf %48, %50 : vector<8x128xf32>
    %54 = arith.addf %52, %53 : vector<8x128xf32>
    %55 = math.tanh %54 : vector<8x128xf32>
    %56 = arith.mulf %51, %55 : vector<8x128xf32>
    %c3_i32 = arith.constant 3 : i32
    %c0_18 = arith.constant 0 : index
    %c0_19 = arith.constant 0 : index
    %57 = vector.load %arg1[%c0_18, %c0_19] : memref<128x512xf32, #tpu.memory_space<vmem>>, vector<128x512xf32>
    %cst_20 = arith.constant dense<0.000000e+00> : vector<8x512xf32>
    %58 = tpu.matmul %56, %57, %cst_20 {dimension_numbers = #tpu.dot_dimension_numbers<[1], [0], [0], [1], [0, 0, 1, 1], [], []>} : vector<8x128xf32>, vector<128x512xf32>, vector<8x512xf32> -> vector<8x512xf32>
    %59 = arith.index_cast %c3_i32 : i32 to index
    %c0_21 = arith.constant 0 : index
    %c0_22 = arith.constant 0 : index
    %60 = vector.load %arg0[%59, %c0_21, %c0_22] : memref<9x8x512xf32, #tpu.memory_space<vmem>>, vector<1x8x512xf32>
    %61 = vector.shape_cast %60 : vector<1x8x512xf32> to vector<8x512xf32>
    %62 = arith.addf %58, %61 : vector<8x512xf32>
    %63 = math.tanh %62 : vector<8x512xf32>
    %cst_23 = arith.constant 5.000000e-01 : f32
    %64 = vector.broadcast %cst_23 : f32 to vector<8x512xf32>
    %65 = arith.mulf %64, %63 : vector<8x512xf32>
    %cst_24 = arith.constant 5.000000e-01 : f32
    %66 = vector.broadcast %cst_24 : f32 to vector<8x512xf32>
    %67 = arith.addf %65, %66 : vector<8x512xf32>
    %68 = vector.extract_strided_slice %67 {offsets = [0, 0], sizes = [8, 128], strides = [1, 1]} : vector<8x512xf32> to vector<8x128xf32>
    %69 = vector.extract_strided_slice %67 {offsets = [0, 128], sizes = [8, 128], strides = [1, 1]} : vector<8x512xf32> to vector<8x128xf32>
    %70 = vector.extract_strided_slice %63 {offsets = [0, 256], sizes = [8, 128], strides = [1, 1]} : vector<8x512xf32> to vector<8x128xf32>
    %71 = vector.extract_strided_slice %67 {offsets = [0, 384], sizes = [8, 128], strides = [1, 1]} : vector<8x512xf32> to vector<8x128xf32>
    %72 = arith.mulf %69, %54 : vector<8x128xf32>
    %73 = arith.mulf %68, %70 : vector<8x128xf32>
    %74 = arith.addf %72, %73 : vector<8x128xf32>
    %75 = math.tanh %74 : vector<8x128xf32>
    %76 = arith.mulf %71, %75 : vector<8x128xf32>
    %c4_i32 = arith.constant 4 : i32
    %c0_25 = arith.constant 0 : index
    %c0_26 = arith.constant 0 : index
    %77 = vector.load %arg1[%c0_25, %c0_26] : memref<128x512xf32, #tpu.memory_space<vmem>>, vector<128x512xf32>
    %cst_27 = arith.constant dense<0.000000e+00> : vector<8x512xf32>
    %78 = tpu.matmul %76, %77, %cst_27 {dimension_numbers = #tpu.dot_dimension_numbers<[1], [0], [0], [1], [0, 0, 1, 1], [], []>} : vector<8x128xf32>, vector<128x512xf32>, vector<8x512xf32> -> vector<8x512xf32>
    %79 = arith.index_cast %c4_i32 : i32 to index
    %c0_28 = arith.constant 0 : index
    %c0_29 = arith.constant 0 : index
    %80 = vector.load %arg0[%79, %c0_28, %c0_29] : memref<9x8x512xf32, #tpu.memory_space<vmem>>, vector<1x8x512xf32>
    %81 = vector.shape_cast %80 : vector<1x8x512xf32> to vector<8x512xf32>
    %82 = arith.addf %78, %81 : vector<8x512xf32>
    %83 = math.tanh %82 : vector<8x512xf32>
    %cst_30 = arith.constant 5.000000e-01 : f32
    %84 = vector.broadcast %cst_30 : f32 to vector<8x512xf32>
    %85 = arith.mulf %84, %83 : vector<8x512xf32>
    %cst_31 = arith.constant 5.000000e-01 : f32
    %86 = vector.broadcast %cst_31 : f32 to vector<8x512xf32>
    %87 = arith.addf %85, %86 : vector<8x512xf32>
    %88 = vector.extract_strided_slice %87 {offsets = [0, 0], sizes = [8, 128], strides = [1, 1]} : vector<8x512xf32> to vector<8x128xf32>
    %89 = vector.extract_strided_slice %87 {offsets = [0, 128], sizes = [8, 128], strides = [1, 1]} : vector<8x512xf32> to vector<8x128xf32>
    %90 = vector.extract_strided_slice %83 {offsets = [0, 256], sizes = [8, 128], strides = [1, 1]} : vector<8x512xf32> to vector<8x128xf32>
    %91 = vector.extract_strided_slice %87 {offsets = [0, 384], sizes = [8, 128], strides = [1, 1]} : vector<8x512xf32> to vector<8x128xf32>
    %92 = arith.mulf %89, %74 : vector<8x128xf32>
    %93 = arith.mulf %88, %90 : vector<8x128xf32>
    %94 = arith.addf %92, %93 : vector<8x128xf32>
    %95 = math.tanh %94 : vector<8x128xf32>
    %96 = arith.mulf %91, %95 : vector<8x128xf32>
    %c5_i32 = arith.constant 5 : i32
    %c0_32 = arith.constant 0 : index
    %c0_33 = arith.constant 0 : index
    %97 = vector.load %arg1[%c0_32, %c0_33] : memref<128x512xf32, #tpu.memory_space<vmem>>, vector<128x512xf32>
    %cst_34 = arith.constant dense<0.000000e+00> : vector<8x512xf32>
    %98 = tpu.matmul %96, %97, %cst_34 {dimension_numbers = #tpu.dot_dimension_numbers<[1], [0], [0], [1], [0, 0, 1, 1], [], []>} : vector<8x128xf32>, vector<128x512xf32>, vector<8x512xf32> -> vector<8x512xf32>
    %99 = arith.index_cast %c5_i32 : i32 to index
    %c0_35 = arith.constant 0 : index
    %c0_36 = arith.constant 0 : index
    %100 = vector.load %arg0[%99, %c0_35, %c0_36] : memref<9x8x512xf32, #tpu.memory_space<vmem>>, vector<1x8x512xf32>
    %101 = vector.shape_cast %100 : vector<1x8x512xf32> to vector<8x512xf32>
    %102 = arith.addf %98, %101 : vector<8x512xf32>
    %103 = math.tanh %102 : vector<8x512xf32>
    %cst_37 = arith.constant 5.000000e-01 : f32
    %104 = vector.broadcast %cst_37 : f32 to vector<8x512xf32>
    %105 = arith.mulf %104, %103 : vector<8x512xf32>
    %cst_38 = arith.constant 5.000000e-01 : f32
    %106 = vector.broadcast %cst_38 : f32 to vector<8x512xf32>
    %107 = arith.addf %105, %106 : vector<8x512xf32>
    %108 = vector.extract_strided_slice %107 {offsets = [0, 0], sizes = [8, 128], strides = [1, 1]} : vector<8x512xf32> to vector<8x128xf32>
    %109 = vector.extract_strided_slice %107 {offsets = [0, 128], sizes = [8, 128], strides = [1, 1]} : vector<8x512xf32> to vector<8x128xf32>
    %110 = vector.extract_strided_slice %103 {offsets = [0, 256], sizes = [8, 128], strides = [1, 1]} : vector<8x512xf32> to vector<8x128xf32>
    %111 = vector.extract_strided_slice %107 {offsets = [0, 384], sizes = [8, 128], strides = [1, 1]} : vector<8x512xf32> to vector<8x128xf32>
    %112 = arith.mulf %109, %94 : vector<8x128xf32>
    %113 = arith.mulf %108, %110 : vector<8x128xf32>
    %114 = arith.addf %112, %113 : vector<8x128xf32>
    %115 = math.tanh %114 : vector<8x128xf32>
    %116 = arith.mulf %111, %115 : vector<8x128xf32>
    %c6_i32 = arith.constant 6 : i32
    %c0_39 = arith.constant 0 : index
    %c0_40 = arith.constant 0 : index
    %117 = vector.load %arg1[%c0_39, %c0_40] : memref<128x512xf32, #tpu.memory_space<vmem>>, vector<128x512xf32>
    %cst_41 = arith.constant dense<0.000000e+00> : vector<8x512xf32>
    %118 = tpu.matmul %116, %117, %cst_41 {dimension_numbers = #tpu.dot_dimension_numbers<[1], [0], [0], [1], [0, 0, 1, 1], [], []>} : vector<8x128xf32>, vector<128x512xf32>, vector<8x512xf32> -> vector<8x512xf32>
    %119 = arith.index_cast %c6_i32 : i32 to index
    %c0_42 = arith.constant 0 : index
    %c0_43 = arith.constant 0 : index
    %120 = vector.load %arg0[%119, %c0_42, %c0_43] : memref<9x8x512xf32, #tpu.memory_space<vmem>>, vector<1x8x512xf32>
    %121 = vector.shape_cast %120 : vector<1x8x512xf32> to vector<8x512xf32>
    %122 = arith.addf %118, %121 : vector<8x512xf32>
    %123 = math.tanh %122 : vector<8x512xf32>
    %cst_44 = arith.constant 5.000000e-01 : f32
    %124 = vector.broadcast %cst_44 : f32 to vector<8x512xf32>
    %125 = arith.mulf %124, %123 : vector<8x512xf32>
    %cst_45 = arith.constant 5.000000e-01 : f32
    %126 = vector.broadcast %cst_45 : f32 to vector<8x512xf32>
    %127 = arith.addf %125, %126 : vector<8x512xf32>
    %128 = vector.extract_strided_slice %127 {offsets = [0, 0], sizes = [8, 128], strides = [1, 1]} : vector<8x512xf32> to vector<8x128xf32>
    %129 = vector.extract_strided_slice %127 {offsets = [0, 128], sizes = [8, 128], strides = [1, 1]} : vector<8x512xf32> to vector<8x128xf32>
    %130 = vector.extract_strided_slice %123 {offsets = [0, 256], sizes = [8, 128], strides = [1, 1]} : vector<8x512xf32> to vector<8x128xf32>
    %131 = vector.extract_strided_slice %127 {offsets = [0, 384], sizes = [8, 128], strides = [1, 1]} : vector<8x512xf32> to vector<8x128xf32>
    %132 = arith.mulf %129, %114 : vector<8x128xf32>
    %133 = arith.mulf %128, %130 : vector<8x128xf32>
    %134 = arith.addf %132, %133 : vector<8x128xf32>
    %135 = math.tanh %134 : vector<8x128xf32>
    %136 = arith.mulf %131, %135 : vector<8x128xf32>
    %c7_i32 = arith.constant 7 : i32
    %c0_46 = arith.constant 0 : index
    %c0_47 = arith.constant 0 : index
    %137 = vector.load %arg1[%c0_46, %c0_47] : memref<128x512xf32, #tpu.memory_space<vmem>>, vector<128x512xf32>
    %cst_48 = arith.constant dense<0.000000e+00> : vector<8x512xf32>
    %138 = tpu.matmul %136, %137, %cst_48 {dimension_numbers = #tpu.dot_dimension_numbers<[1], [0], [0], [1], [0, 0, 1, 1], [], []>} : vector<8x128xf32>, vector<128x512xf32>, vector<8x512xf32> -> vector<8x512xf32>
    %139 = arith.index_cast %c7_i32 : i32 to index
    %c0_49 = arith.constant 0 : index
    %c0_50 = arith.constant 0 : index
    %140 = vector.load %arg0[%139, %c0_49, %c0_50] : memref<9x8x512xf32, #tpu.memory_space<vmem>>, vector<1x8x512xf32>
    %141 = vector.shape_cast %140 : vector<1x8x512xf32> to vector<8x512xf32>
    %142 = arith.addf %138, %141 : vector<8x512xf32>
    %143 = math.tanh %142 : vector<8x512xf32>
    %cst_51 = arith.constant 5.000000e-01 : f32
    %144 = vector.broadcast %cst_51 : f32 to vector<8x512xf32>
    %145 = arith.mulf %144, %143 : vector<8x512xf32>
    %cst_52 = arith.constant 5.000000e-01 : f32
    %146 = vector.broadcast %cst_52 : f32 to vector<8x512xf32>
    %147 = arith.addf %145, %146 : vector<8x512xf32>
    %148 = vector.extract_strided_slice %147 {offsets = [0, 0], sizes = [8, 128], strides = [1, 1]} : vector<8x512xf32> to vector<8x128xf32>
    %149 = vector.extract_strided_slice %147 {offsets = [0, 128], sizes = [8, 128], strides = [1, 1]} : vector<8x512xf32> to vector<8x128xf32>
    %150 = vector.extract_strided_slice %143 {offsets = [0, 256], sizes = [8, 128], strides = [1, 1]} : vector<8x512xf32> to vector<8x128xf32>
    %151 = vector.extract_strided_slice %147 {offsets = [0, 384], sizes = [8, 128], strides = [1, 1]} : vector<8x512xf32> to vector<8x128xf32>
    %152 = arith.mulf %149, %134 : vector<8x128xf32>
    %153 = arith.mulf %148, %150 : vector<8x128xf32>
    %154 = arith.addf %152, %153 : vector<8x128xf32>
    %155 = math.tanh %154 : vector<8x128xf32>
    %156 = arith.mulf %151, %155 : vector<8x128xf32>
    %c8_i32 = arith.constant 8 : i32
    %c0_53 = arith.constant 0 : index
    %c0_54 = arith.constant 0 : index
    %157 = vector.load %arg1[%c0_53, %c0_54] : memref<128x512xf32, #tpu.memory_space<vmem>>, vector<128x512xf32>
    %cst_55 = arith.constant dense<0.000000e+00> : vector<8x512xf32>
    %158 = tpu.matmul %156, %157, %cst_55 {dimension_numbers = #tpu.dot_dimension_numbers<[1], [0], [0], [1], [0, 0, 1, 1], [], []>} : vector<8x128xf32>, vector<128x512xf32>, vector<8x512xf32> -> vector<8x512xf32>
    %159 = arith.index_cast %c8_i32 : i32 to index
    %c0_56 = arith.constant 0 : index
    %c0_57 = arith.constant 0 : index
    %160 = vector.load %arg0[%159, %c0_56, %c0_57] : memref<9x8x512xf32, #tpu.memory_space<vmem>>, vector<1x8x512xf32>
    %161 = vector.shape_cast %160 : vector<1x8x512xf32> to vector<8x512xf32>
    %162 = arith.addf %158, %161 : vector<8x512xf32>
    %163 = math.tanh %162 : vector<8x512xf32>
    %cst_58 = arith.constant 5.000000e-01 : f32
    %164 = vector.broadcast %cst_58 : f32 to vector<8x512xf32>
    %165 = arith.mulf %164, %163 : vector<8x512xf32>
    %cst_59 = arith.constant 5.000000e-01 : f32
    %166 = vector.broadcast %cst_59 : f32 to vector<8x512xf32>
    %167 = arith.addf %165, %166 : vector<8x512xf32>
    %168 = vector.extract_strided_slice %167 {offsets = [0, 0], sizes = [8, 128], strides = [1, 1]} : vector<8x512xf32> to vector<8x128xf32>
    %169 = vector.extract_strided_slice %167 {offsets = [0, 128], sizes = [8, 128], strides = [1, 1]} : vector<8x512xf32> to vector<8x128xf32>
    %170 = vector.extract_strided_slice %163 {offsets = [0, 256], sizes = [8, 128], strides = [1, 1]} : vector<8x512xf32> to vector<8x128xf32>
    %171 = vector.extract_strided_slice %167 {offsets = [0, 384], sizes = [8, 128], strides = [1, 1]} : vector<8x512xf32> to vector<8x128xf32>
    %172 = arith.mulf %169, %154 : vector<8x128xf32>
    %173 = arith.mulf %168, %170 : vector<8x128xf32>
    %174 = arith.addf %172, %173 : vector<8x128xf32>
    %175 = math.tanh %174 : vector<8x128xf32>
    %176 = arith.mulf %171, %175 : vector<8x128xf32>
    %c8_i32_60 = arith.constant 8 : i32
    %c0_61 = arith.constant 0 : index
    %c0_62 = arith.constant 0 : index
    %177 = vector.load %arg2[%c0_61, %c0_62] : memref<8x128xf32, #tpu.memory_space<vmem>>, vector<8x128xf32>
    tpu.vector_store %arg2[%c0_61, %c0_62], %176 {strides = array<i32>} : memref<8x128xf32, #tpu.memory_space<vmem>>, vector<8x128xf32>,
    return
  }
}

</mosaic_0001>

<bundles_post_ra>
// kernel: stock_lstm_forward.1
= control target key start
LH: loop header
LB: loop body
LE: loop exit
PB: predicated region body
PF: predicated region fallthrough
CT: control target
= control target key end

     0   :  { %7 = vsyncpa [#allocation3], 0  ;;  %s2072_s9 = smov [#allocation2]   ;;  %s2578_s0 = inlined_call_operand.vmem [shape: f32[9,8,512], index: 0, kind: input, shape index: {}]   ;;  %s2579_s1 = inlined_call_operand.hbm [shape: f32[128,512], index: 1, kind: input, shape index: {}]   ;;  %s2580_s2 = inlined_call_operand.vmem [shape: f32[8,128], index: 2, kind: output, shape index: {}]  }
   0x1   :  { %s15_s10 = sshll.u32 %s2072_s9, 4  ;;  %s2048_s13 = scalar_lea.hbm %s2579_s1, 8192  ;;  %s16_s10 = int_to_ptr.vmem [resolvable:$true] %s15_s10 }
   0x2   :  { %p2049_p0 = scmp.ne.s32.totalorder %s2579_s1, %s2048_s13  ;;  %p2052_p1 = scmp.lt.u32.totalorder %s2048_s13, %s2579_s1 }
   0x4   :  { %p2054_p2 = pnand %p2052_p1, %p2049_p0 }
   0x6   :  { %2057 = shalt.err (!%p2054_p2)
}
   0x7   :  { %s2058_s18 = scalar_lea.vmem %s16_s10, 8192  ;;  %p2063_p4 = scmp.lt.s32.totalorder %s16_s10, %s16_s10 }
   0x8   :  { %p2059_p3 = scmp.ne.s32.totalorder %s16_s10, %s2058_s18  ;;  %p2064_p5 = scmp.lt.s32.totalorder %s2058_s18, %s2058_s18 }
   0xa   :  { %p2065_p6 = por %p2064_p5, %p2063_p4 }
   0xc   :  { %p2066_p7 = pnand %p2065_p6, %p2059_p3 }
   0xe   :  { %2069 = shalt.err (!%p2066_p7)
}
   0xf   :  { %s2073_s19 = smov 512   ;;  %s2074_s20 = smov 32  }
  0x10   :  { %21 = dma.hbm_to_vmem [thread:$0]  %s2579_s1, 8192, %s16_s10, [#allocation3], %s2073_s19, %s2073_s19, %s2074_s20  }
  0x11   :  { %2070 = dma.done.wait [#allocation3], 8192  }
  0x12   :  { %2071 = vsyncadd [#allocation3], 4294959104  ;;  %v2075_v0 = vmov 0.0   ;;  %v45_v1 = vld [vmem:[#allocation2 + $0x8] sm:$0xff]  ;;  %v44_v3 = vld [vmem:[#allocation2] sm:$0xff] }
  0x13   :  { %177 = vmatprep.mubr.f32.mxu0 %v2075_v0  ;;  %248 = vmatprep.mubr.f32.mxu1 %v2075_v0  ;;  %v49_v2 = vld [vmem:[#allocation2 + $0x28] sm:$0xff]  ;;  %v48_v5 = vld [vmem:[#allocation2 + $0x20] sm:$0xff]  ;;  %v47_v10 = vld [vmem:[#allocation2 + $0x18] sm:$0xff] }
  0x14   :  { %v2105_v4 = vpack.c.bf16 %v49_v2, %v45_v1  ;;  %v53_v6 = vld [vmem:[#allocation2 + $0x48] sm:$0xff]  ;;  %v2107_v8 = vpack.c.bf16 %v48_v5, %v44_v3  ;;  %v51_v11 = vld [vmem:[#allocation2 + $0x38] sm:$0xff]  ;;  %v52_v12 = vld [vmem:[#allocation2 + $0x40] sm:$0xff] }
  0x15   :  { %v57_v7 = vld [vmem:[#allocation2 + $0x68] sm:$0xff]  ;;  %v2112_v13 = vpack.c.bf16 %v51_v11, %v47_v10  ;;  %v56_v14 = vld [vmem:[#allocation2 + $0x60] sm:$0xff]  ;;  %v46_v15 = vld [vmem:[#allocation2 + $0x10] sm:$0xff] }
  0x16   :  { %v2109_v9 = vpack.c.bf16 %v57_v7, %v53_v6  ;;  %1443 = vmatprep.subr.bf16.mxu0 %v2105_v4  ;;  %v50_v16 = vld [vmem:[#allocation2 + $0x30] sm:$0xff]  ;;  %v2115_v17 = vpack.c.bf16 %v56_v14, %v52_v12  ;;  %v61_v19 = vld [vmem:[#allocation2 + $0x88] sm:$0xff]  ;;  %v55_v21 = vld [vmem:[#allocation2 + $0x58] sm:$0xff] }
  0x17   :  { %1445 = vmatpush1.bf16.msra.mxu0 %v2107_v8  ;;  %v2117_v18 = vpack.c.bf16 %v50_v16, %v46_v15  ;;  %v65_v20 = vld [vmem:[#allocation2 + $0xa8] sm:$0xff]  ;;  %1475 = vmatprep.subr.bf16.mxu1 %v2112_v13  ;;  %v59_v23 = vld [vmem:[#allocation2 + $0x78] sm:$0xff]  ;;  %v60_v24 = vld [vmem:[#allocation2 + $0x80] sm:$0xff] }
  0x18   :  { %1447 = vmatprep.subr.bf16.mxu0 %v2109_v9  ;;  %v2121_v22 = vpack.c.bf16 %v65_v20, %v61_v19  ;;  %v64_v25 = vld [vmem:[#allocation2 + $0xa0] sm:$0xff]  ;;  %v2124_v26 = vpack.c.bf16 %v59_v23, %v55_v21  ;;  %v54_v27 = vld [vmem:[#allocation2 + $0x50] sm:$0xff]  ;;  %v69_v29 = vld [vmem:[#allocation2 + $0xc8] sm:$0xff] }
  0x19   :  { %1477 = vmatpush1.bf16.msra.mxu1 %v2117_v18  ;;  %v58_v28 = vld [vmem:[#allocation2 + $0x70] sm:$0xff]  ;;  %v73_v31 = vld [vmem:[#allocation2 + $0xe8] sm:$0xff]  ;;  %v63_v32 = vld [vmem:[#allocation2 + $0x98] sm:$0xff]  ;;  %v2130_v34 = vpack.c.bf16 %v64_v25, %v60_v24 }
  0x1a   :  { %v2126_v30 = vpack.c.bf16 %v58_v28, %v54_v27  ;;  %v67_v33 = vld [vmem:[#allocation2 + $0xb8] sm:$0xff]  ;;  %1479 = vmatprep.subr.bf16.mxu1 %v2124_v26  ;;  %v68_v36 = vld [vmem:[#allocation2 + $0xc0] sm:$0xff]  ;;  %v62_v37 = vld [vmem:[#allocation2 + $0x90] sm:$0xff]  ;;  %v2135_v38 = vpack.c.bf16 %v73_v31, %v69_v29 }
  0x1b   :  { %1449 = vmatpush1.bf16.msra.mxu0 %v2115_v17  ;;  %v2132_v35 = vpack.c.bf16 %v67_v33, %v63_v32  ;;  %v72_v39 = vld [vmem:[#allocation2 + $0xe0] sm:$0xff]  ;;  %v66_v40 = vld [vmem:[#allocation2 + $0xb0] sm:$0xff]  ;;  %v77_v41 = vld [vmem:[#allocation2 + $0x108] sm:$0xff] }
  0x1c   :  { %1451 = vmatprep.subr.bf16.mxu0 %v2121_v22  ;;  %v2138_v42 = vpack.c.bf16 %v66_v40, %v62_v37  ;;  %v81_v43 = vld [vmem:[#allocation2 + $0x128] sm:$0xff]  ;;  %v71_v44 = vld [vmem:[#allocation2 + $0xd8] sm:$0xff]  ;;  %v70_v47 = vld [vmem:[#allocation2 + $0xd0] sm:$0xff]  ;;  %v2144_v49 = vpack.c.bf16 %v72_v39, %v68_v36 }
  0x1d   :  { %1481 = vmatpush1.bf16.msra.mxu1 %v2126_v30  ;;  %v75_v45 = vld [vmem:[#allocation2 + $0xf8] sm:$0xff]  ;;  %v74_v48 = vld [vmem:[#allocation2 + $0xf0] sm:$0xff]  ;;  %v2147_v51 = vpack.c.bf16 %v81_v43, %v77_v41  ;;  %v76_v52 = vld [vmem:[#allocation2 + $0x100] sm:$0xff] }
  0x1e   :  { %1483 = vmatprep.subr.bf16.mxu1 %v2132_v35  ;;  %v2141_v46 = vpack.c.bf16 %v75_v45, %v71_v44  ;;  %v79_v50 = vld [vmem:[#allocation2 + $0x118] sm:$0xff]  ;;  %v80_v53 = vld [vmem:[#allocation2 + $0x120] sm:$0xff]  ;;  %v2150_v55 = vpack.c.bf16 %v74_v48, %v70_v47  ;;  %v85_v56 = vld [vmem:[#allocation2 + $0x148] sm:$0xff] }
  0x1f   :  { %1453 = vmatpush1.bf16.msra.mxu0 %v2130_v34  ;;  %v83_v54 = vld [vmem:[#allocation2 + $0x138] sm:$0xff]  ;;  %v89_v57 = vld [vmem:[#allocation2 + $0x168] sm:$0xff]  ;;  %v78_v59 = vld [vmem:[#allocation2 + $0x110] sm:$0xff]  ;;  %v2156_v61 = vpack.c.bf16 %v80_v53, %v76_v52 }
  0x20   :  { %1455 = vmatprep.subr.bf16.mxu0 %v2135_v38  ;;  %v2153_v58 = vpack.c.bf16 %v83_v54, %v79_v50  ;;  %v82_v60 = vld [vmem:[#allocation2 + $0x130] sm:$0xff]  ;;  %v87_v62 = vld [vmem:[#allocation2 + $0x158] sm:$0xff]  ;;  %v2159_v1 = vpack.c.bf16 %v89_v57, %v85_v56  ;;  %v84_v2 = vld [vmem:[#allocation2 + $0x140] sm:$0xff] }
  0x21   :  { %1485 = vmatpush1.bf16.msra.mxu1 %v2138_v42  ;;  %v91_v63 = vld [vmem:[#allocation2 + $0x178] sm:$0xff]  ;;  %v88_v3 = vld [vmem:[#allocation2 + $0x160] sm:$0xff]  ;;  %v2162_v5 = vpack.c.bf16 %v82_v60, %v78_v59  ;;  %v93_v6 = vld [vmem:[#allocation2 + $0x188] sm:$0xff] }
  0x22   :  { %1487 = vmatprep.subr.bf16.mxu1 %v2141_v46  ;;  %v97_v7 = vld [vmem:[#allocation2 + $0x1a8] sm:$0xff]  ;;  %v86_v10 = vld [vmem:[#allocation2 + $0x150] sm:$0xff]  ;;  %v2165_v11 = vpack.c.bf16 %v91_v63, %v87_v62  ;;  %v95_v14 = vld [vmem:[#allocation2 + $0x198] sm:$0xff]  ;;  %v2168_v16 = vpack.c.bf16 %v88_v3, %v84_v2 }
  0x23   :  { %1457 = vmatpush1.bf16.msra.mxu0 %v2144_v49  ;;  %v90_v12 = vld [vmem:[#allocation2 + $0x170] sm:$0xff]  ;;  %v99_v15 = vld [vmem:[#allocation2 + $0x1b8] sm:$0xff]  ;;  %v25_v19 = vld [vmem:[%s2578_s0] sm:$0xff]  ;;  %v2180_v23 = vpack.c.bf16 %v97_v7, %v93_v6 }
  0x24   :  { %1459 = vmatprep.subr.bf16.mxu0 %v2147_v51  ;;  %v26_v20 = vld [vmem:[%s2578_s0 + $0x8] sm:$0xff]  ;;  %v27_v21 = vld [vmem:[%s2578_s0 + $0x10] sm:$0xff]  ;;  %v92_v24 = vld [vmem:[#allocation2 + $0x180] sm:$0xff]  ;;  %1958 = vtanh.f32 %v25_v19  ;;  %v2183_v27 = vpack.c.bf16 %v90_v12, %v86_v10  ;;  %v2186_v31 = vpack.c.bf16 %v99_v15, %v95_v14 }
  0x25   :  { %1489 = vmatpush1.bf16.msra.mxu1 %v2150_v55  ;;  %v96_v25 = vld [vmem:[#allocation2 + $0x1a0] sm:$0xff]  ;;  %v101_v28 = vld [vmem:[#allocation2 + $0x1c8] sm:$0xff]  ;;  %1960 = vtanh.f32 %v26_v20  ;;  %v94_v32 = vld [vmem:[#allocation2 + $0x190] sm:$0xff] }
  0x26   :  { %1491 = vmatprep.subr.bf16.mxu1 %v2153_v58  ;;  %v105_v29 = vld [vmem:[#allocation2 + $0x1e8] sm:$0xff]  ;;  %v98_v33 = vld [vmem:[#allocation2 + $0x1b0] sm:$0xff]  ;;  %1962 = vtanh.f32 %v27_v21  ;;  %v2189_v36 = vpack.c.bf16 %v96_v25, %v92_v24  ;;  %v103_v37 = vld [vmem:[#allocation2 + $0x1d8] sm:$0xff] }
  0x27   :  { %1461 = vmatpush1.bf16.msra.mxu0 %v2156_v61  ;;  %v107_v39 = vld [vmem:[#allocation2 + $0x1f8] sm:$0xff]  ;;  %v2192_v40 = vpack.c.bf16 %v105_v29, %v101_v28  ;;  %v100_v41 = vld [vmem:[#allocation2 + $0x1c0] sm:$0xff]  ;;  %v2195_v44 = vpack.c.bf16 %v98_v33, %v94_v32  ;;  %v102_v47 = vld [vmem:[#allocation2 + $0x1d0] sm:$0xff] }
  0x28   :  { %1463 = vmatprep.subr.bf16.mxu0 %v2159_v1  ;;  %v104_v43 = vld [vmem:[#allocation2 + $0x1e0] sm:$0xff]  ;;  %v2198_v45 = vpack.c.bf16 %v107_v39, %v103_v37  ;;  %v106_v48 = vld [vmem:[#allocation2 + $0x1f0] sm:$0xff]  ;;  %v28_v52 = vld [vmem:[%s2578_s0 + $0x18] sm:$0xff] }
  0x29   :  { %1493 = vmatpush1.bf16.msra.mxu1 %v2162_v5  ;;  %v2201_v50 = vpack.c.bf16 %v104_v43, %v100_v41  ;;  %v2208_v53 = vpack.c.bf16 %v106_v48, %v102_v47  ;;  %1964 = vtanh.f32 %v28_v52  ;;  %v1410_v19 = vld [vmem:[%s2578_s0 + $0x20] sm:$0xff]  ;;  %v1412_v20 = vld [vmem:[%s2578_s0 + $0x30] sm:$0xff]  ;;  %v1411_v21 = vld [vmem:[%s2578_s0 + $0x28] sm:$0xff] }
  0x2a   :  { %1495 = vmatprep.subr.bf16.mxu1 %v2165_v11  ;;  %v1413_v39 = vld [vmem:[%s2578_s0 + $0x38] sm:$0xff] }
  0x2b   :  { %1465 = vmatpush1.bf16.msra.mxu0 %v2168_v16 }
  0x2c   :  { %1467 = vmatprep.subr.bf16.mxu0 %v2180_v23 }
  0x2d   :  { %1497 = vmatpush1.bf16.msra.mxu1 %v2183_v27 }
  0x2e   :  { %1499 = vmatprep.subr.bf16.mxu1 %v2186_v31  ;;  %v1959_v54 = vpop.eup %1958 }
  0x2f   :  { %1469 = vmatpush1.bf16.msra.mxu0 %v2189_v36  ;;  %v1961_v56 = vpop.eup %1960  ;;  %v33_v57 = vmul.f32 0.5, %v1959_v54 }
  0x30   :  { %1471 = vmatprep.subr.bf16.mxu0 %v2192_v40  ;;  %v1963_v59 = vpop.eup %1962  ;;  %v34_v60 = vmul.f32 0.5, %v1961_v56 }
  0x31   :  { %1501 = vmatpush1.bf16.msra.mxu1 %v2195_v44  ;;  %v36_v62 = vadd.f32 0.5, %v33_v57 }
  0x32   :  { %1503 = vmatprep.subr.bf16.mxu1 %v2198_v45  ;;  %v37_v63 = vadd.f32 0.5, %v34_v60 }
  0x33   :  { %1473 = vmatpush1.bf16.msra.mxu0 %v2201_v50  ;;  %v40_v2 = vmul.f32 %v1963_v59, %v36_v62  ;;  %v1965_v7 = vpop.eup %1964 }
  0x34   :  { %1507 = vmatprep.subr.bf16.mxu0 %v2105_v4  ;;  %v39_v3 = vmul.f32 0.0, %v37_v63  ;;  %v35_v10 = vmul.f32 0.5, %v1965_v7 }
  0x35   :  { %1505 = vmatpush1.bf16.msra.mxu1 %v2208_v53 }
  0x36   :  { %1539 = vmatprep.subr.bf16.mxu1 %v2112_v13  ;;  %v2215_v6 = vadd.f32 %v40_v2, %v39_v3  ;;  %v38_v12 = vadd.f32 0.5, %v35_v10 }
  0x38   :  { %1966 = vtanh.f32 %v2215_v6 }
  0x42   :  { %v1967_v14 = vpop.eup %1966 }
  0x43   :  { %v43_v15 = vmul.f32 %v1967_v14, %v38_v12  ;;  %v1415_v12 = vld [vmem:[%s2578_s0 + $0x48] sm:$0xff] }
  0x45   :  { %178 = vmatmul.mubr.f32.vlgmr.msra.gmra.mrb[0].mxu0 %v43_v15  ;;  %249 = vmatmul.mubr.f32.vlgmr.msra.gmra.mrb[0].mxu1 %v43_v15  ;;  %v1416_v15 = vld [vmem:[%s2578_s0 + $0x50] sm:$0xff] }
  0x46   :  { %1509 = vmatpush1.bf16.msra.mxu0 %v2107_v8  ;;  %1541 = vmatpush1.bf16.msra.mxu1 %v2117_v18 }
  0x47   :  { %1511 = vmatprep.subr.bf16.mxu0 %v2109_v9  ;;  %1543 = vmatprep.subr.bf16.mxu1 %v2124_v26 }
  0x48   :  { %339 = vmatprep.mubr.f32.mxu0 %v2075_v0  ;;  %410 = vmatprep.mubr.f32.mxu1 %v2075_v0 }
  0x4a   :  { %1513 = vmatpush1.bf16.msra.mxu0 %v2115_v17  ;;  %1545 = vmatpush1.bf16.msra.mxu1 %v2126_v30 }
  0x4b   :  { %1515 = vmatprep.subr.bf16.mxu0 %v2121_v22  ;;  %1547 = vmatprep.subr.bf16.mxu1 %v2132_v35 }
  0x4e   :  { %1517 = vmatpush1.bf16.msra.mxu0 %v2130_v34  ;;  %1549 = vmatpush1.bf16.msra.mxu1 %v2138_v42 }
  0x4f   :  { %1519 = vmatprep.subr.bf16.mxu0 %v2135_v38  ;;  %1551 = vmatprep.subr.bf16.mxu1 %v2141_v46 }
  0x52   :  { %1521 = vmatpush1.bf16.msra.mxu0 %v2144_v49  ;;  %1553 = vmatpush1.bf16.msra.mxu1 %v2150_v55 }
  0x53   :  { %1523 = vmatprep.subr.bf16.mxu0 %v2147_v51  ;;  %1555 = vmatprep.subr.bf16.mxu1 %v2153_v58 }
  0x56   :  { %1525 = vmatpush1.bf16.msra.mxu0 %v2156_v61  ;;  %1557 = vmatpush1.bf16.msra.mxu1 %v2162_v5 }
  0x57   :  { %1527 = vmatprep.subr.bf16.mxu0 %v2159_v1  ;;  %1559 = vmatprep.subr.bf16.mxu1 %v2165_v11 }
  0x5a   :  { %1529 = vmatpush1.bf16.msra.mxu0 %v2168_v16  ;;  %1561 = vmatpush1.bf16.msra.mxu1 %v2183_v27 }
  0x5b   :  { %1531 = vmatprep.subr.bf16.mxu0 %v2180_v23  ;;  %1563 = vmatprep.subr.bf16.mxu1 %v2186_v31 }
  0x5e   :  { %1533 = vmatpush1.bf16.msra.mxu0 %v2189_v36  ;;  %1565 = vmatpush1.bf16.msra.mxu1 %v2195_v44 }
  0x5f   :  { %1535 = vmatprep.subr.bf16.mxu0 %v2192_v40  ;;  %1567 = vmatprep.subr.bf16.mxu1 %v2198_v45 }
  0x62   :  { %1537 = vmatpush1.bf16.msra.mxu0 %v2201_v50  ;;  %1569 = vmatpush1.bf16.msra.mxu1 %v2208_v53 }
  0x63   :  { %1571 = vmatprep.subr.bf16.mxu0 %v2105_v4  ;;  %1603 = vmatprep.subr.bf16.mxu1 %v2112_v13 }
 0x118   :  { %v179_v24 = vpop.f32.mrb[0].mxu0  ;;  %v250_v25 = vpop.f32.mrb[0].mxu1 }
 0x119   :  { %v180_v28 = vadd.f32 %v1410_v19, %v179_v24  ;;  %v181_v29 = vpop.f32.mrb[1].mxu0  ;;  %v251_v32 = vadd.f32 %v1412_v20, %v250_v25  ;;  %v252_v33 = vpop.f32.mrb[1].mxu1 }
 0x11a   :  { %v182_v37 = vadd.f32 %v1411_v21, %v181_v29  ;;  %v253_v41 = vadd.f32 %v1413_v39, %v252_v33  ;;  %v1417_v29 = vld [vmem:[%s2578_s0 + $0x58] sm:$0xff] }
 0x11b   :  { %1968 = vtanh.f32 %v180_v28 }
 0x11c   :  { %1970 = vtanh.f32 %v182_v37 }
 0x11d   :  { %1972 = vtanh.f32 %v251_v32 }
 0x11e   :  { %1974 = vtanh.f32 %v253_v41 }
 0x125   :  { %v1969_v43 = vpop.eup %1968 }
 0x126   :  { %v1971_v47 = vpop.eup %1970  ;;  %v259_v48 = vmul.f32 0.5, %v1969_v43 }
 0x127   :  { %v1973_v52 = vpop.eup %1972  ;;  %v260_v54 = vmul.f32 0.5, %v1971_v47 }
 0x128   :  { %v262_v56 = vadd.f32 0.5, %v259_v48  ;;  %v1975_v63 = vpop.eup %1974 }
 0x129   :  { %v263_v57 = vadd.f32 0.5, %v260_v54  ;;  %v261_v2 = vmul.f32 0.5, %v1975_v63 }
 0x12a   :  { %v266_v59 = vmul.f32 %v1973_v52, %v262_v56 }
 0x12b   :  { %v265_v60 = vmul.f32 %v263_v57, %v2215_v6  ;;  %v264_v3 = vadd.f32 0.5, %v261_v2  ;;  %v1414_v6 = vld [vmem:[%s2578_s0 + $0x40] sm:$0xff] }
 0x12d   :  { %v2265_v62 = vadd.f32 %v266_v59, %v265_v60 }
 0x12f   :  { %1976 = vtanh.f32 %v2265_v62 }
 0x139   :  { %v1977_v7 = vpop.eup %1976 }
 0x13a   :  { %v269_v10 = vmul.f32 %v1977_v7, %v264_v3  ;;  %v1419_v3 = vld [vmem:[%s2578_s0 + $0x68] sm:$0xff] }
 0x13c   :  { %340 = vmatmul.mubr.f32.vlgmr.msra.gmra.mrb[2].mxu0 %v269_v10  ;;  %411 = vmatmul.mubr.f32.vlgmr.msra.gmra.mrb[2].mxu1 %v269_v10  ;;  %v1420_v10 = vld [vmem:[%s2578_s0 + $0x70] sm:$0xff] }
 0x13d   :  { %1573 = vmatpush1.bf16.msra.mxu0 %v2107_v8  ;;  %1605 = vmatpush1.bf16.msra.mxu1 %v2117_v18 }
 0x13e   :  { %1575 = vmatprep.subr.bf16.mxu0 %v2109_v9  ;;  %1607 = vmatprep.subr.bf16.mxu1 %v2124_v26 }
 0x13f   :  { %501 = vmatprep.mubr.f32.mxu0 %v2075_v0  ;;  %572 = vmatprep.mubr.f32.mxu1 %v2075_v0 }
 0x141   :  { %1577 = vmatpush1.bf16.msra.mxu0 %v2115_v17  ;;  %1609 = vmatpush1.bf16.msra.mxu1 %v2126_v30 }
 0x142   :  { %1579 = vmatprep.subr.bf16.mxu0 %v2121_v22  ;;  %1611 = vmatprep.subr.bf16.mxu1 %v2132_v35 }
 0x145   :  { %1581 = vmatpush1.bf16.msra.mxu0 %v2130_v34  ;;  %1613 = vmatpush1.bf16.msra.mxu1 %v2138_v42 }
 0x146   :  { %1583 = vmatprep.subr.bf16.mxu0 %v2135_v38  ;;  %1615 = vmatprep.subr.bf16.mxu1 %v2141_v46 }
 0x149   :  { %1585 = vmatpush1.bf16.msra.mxu0 %v2144_v49  ;;  %1617 = vmatpush1.bf16.msra.mxu1 %v2150_v55 }
 0x14a   :  { %1587 = vmatprep.subr.bf16.mxu0 %v2147_v51  ;;  %1619 = vmatprep.subr.bf16.mxu1 %v2153_v58 }
 0x14d   :  { %1589 = vmatpush1.bf16.msra.mxu0 %v2156_v61  ;;  %1621 = vmatpush1.bf16.msra.mxu1 %v2162_v5 }
 0x14e   :  { %1591 = vmatprep.subr.bf16.mxu0 %v2159_v1  ;;  %1623 = vmatprep.subr.bf16.mxu1 %v2165_v11 }
 0x151   :  { %1593 = vmatpush1.bf16.msra.mxu0 %v2168_v16  ;;  %1625 = vmatpush1.bf16.msra.mxu1 %v2183_v27 }
 0x152   :  { %1595 = vmatprep.subr.bf16.mxu0 %v2180_v23  ;;  %1627 = vmatprep.subr.bf16.mxu1 %v2186_v31 }
 0x155   :  { %1597 = vmatpush1.bf16.msra.mxu0 %v2189_v36  ;;  %1629 = vmatpush1.bf16.msra.mxu1 %v2195_v44 }
 0x156   :  { %1599 = vmatprep.subr.bf16.mxu0 %v2192_v40  ;;  %1631 = vmatprep.subr.bf16.mxu1 %v2198_v45 }
 0x159   :  { %1601 = vmatpush1.bf16.msra.mxu0 %v2201_v50  ;;  %1633 = vmatpush1.bf16.msra.mxu1 %v2208_v53 }
 0x15a   :  { %1635 = vmatprep.subr.bf16.mxu0 %v2105_v4  ;;  %1667 = vmatprep.subr.bf16.mxu1 %v2112_v13 }
 0x20f   :  { %v341_v14 = vpop.f32.mrb[2].mxu0  ;;  %v412_v19 = vpop.f32.mrb[2].mxu1 }
 0x210   :  { %v342_v20 = vadd.f32 %v1414_v6, %v341_v14  ;;  %v343_v21 = vpop.f32.mrb[3].mxu0  ;;  %v414_v24 = vpop.f32.mrb[3].mxu1  ;;  %v413_v28 = vadd.f32 %v1416_v15, %v412_v19 }
 0x211   :  { %v344_v25 = vadd.f32 %v1415_v12, %v343_v21  ;;  %v415_v32 = vadd.f32 %v1417_v29, %v414_v24  ;;  %v1421_v21 = vld [vmem:[%s2578_s0 + $0x78] sm:$0xff] }
 0x212   :  { %1978 = vtanh.f32 %v342_v20 }
 0x213   :  { %1980 = vtanh.f32 %v344_v25 }
 0x214   :  { %1982 = vtanh.f32 %v413_v28 }
 0x215   :  { %1984 = vtanh.f32 %v415_v32 }
 0x21c   :  { %v1979_v33 = vpop.eup %1978 }
 0x21d   :  { %v421_v37 = vmul.f32 0.5, %v1979_v33  ;;  %v1981_v39 = vpop.eup %1980 }
 0x21e   :  { %v422_v43 = vmul.f32 0.5, %v1981_v39  ;;  %v1983_v47 = vpop.eup %1982 }
 0x21f   :  { %v424_v41 = vadd.f32 0.5, %v421_v37  ;;  %v1985_v57 = vpop.eup %1984 }
 0x220   :  { %v425_v48 = vadd.f32 0.5, %v422_v43  ;;  %v423_v59 = vmul.f32 0.5, %v1985_v57 }
 0x221   :  { %v428_v52 = vmul.f32 %v1983_v47, %v424_v41 }
 0x222   :  { %v427_v54 = vmul.f32 %v425_v48, %v2265_v62  ;;  %v426_v60 = vadd.f32 0.5, %v423_v59  ;;  %v1418_v62 = vld [vmem:[%s2578_s0 + $0x60] sm:$0xff] }
 0x224   :  { %v2315_v56 = vadd.f32 %v428_v52, %v427_v54 }
 0x226   :  { %1986 = vtanh.f32 %v2315_v56 }
 0x230   :  { %v1987_v63 = vpop.eup %1986 }
 0x231   :  { %v431_v2 = vmul.f32 %v1987_v63, %v426_v60  ;;  %v1423_v60 = vld [vmem:[%s2578_s0 + $0x88] sm:$0xff] }
 0x233   :  { %502 = vmatmul.mubr.f32.vlgmr.msra.gmra.mrb[4].mxu0 %v431_v2  ;;  %573 = vmatmul.mubr.f32.vlgmr.msra.gmra.mrb[4].mxu1 %v431_v2  ;;  %v1424_v2 = vld [vmem:[%s2578_s0 + $0x90] sm:$0xff] }
 0x234   :  { %1637 = vmatpush1.bf16.msra.mxu0 %v2107_v8  ;;  %1669 = vmatpush1.bf16.msra.mxu1 %v2117_v18 }
 0x235   :  { %1639 = vmatprep.subr.bf16.mxu0 %v2109_v9  ;;  %1671 = vmatprep.subr.bf16.mxu1 %v2124_v26 }
 0x236   :  { %663 = vmatprep.mubr.f32.mxu0 %v2075_v0  ;;  %734 = vmatprep.mubr.f32.mxu1 %v2075_v0 }
 0x238   :  { %1641 = vmatpush1.bf16.msra.mxu0 %v2115_v17  ;;  %1673 = vmatpush1.bf16.msra.mxu1 %v2126_v30 }
 0x239   :  { %1643 = vmatprep.subr.bf16.mxu0 %v2121_v22  ;;  %1675 = vmatprep.subr.bf16.mxu1 %v2132_v35 }
 0x23c   :  { %1645 = vmatpush1.bf16.msra.mxu0 %v2130_v34  ;;  %1677 = vmatpush1.bf16.msra.mxu1 %v2138_v42 }
 0x23d   :  { %1647 = vmatprep.subr.bf16.mxu0 %v2135_v38  ;;  %1679 = vmatprep.subr.bf16.mxu1 %v2141_v46 }
 0x240   :  { %1649 = vmatpush1.bf16.msra.mxu0 %v2144_v49  ;;  %1681 = vmatpush1.bf16.msra.mxu1 %v2150_v55 }
 0x241   :  { %1651 = vmatprep.subr.bf16.mxu0 %v2147_v51  ;;  %1683 = vmatprep.subr.bf16.mxu1 %v2153_v58 }
 0x244   :  { %1653 = vmatpush1.bf16.msra.mxu0 %v2156_v61  ;;  %1685 = vmatpush1.bf16.msra.mxu1 %v2162_v5 }
 0x245   :  { %1655 = vmatprep.subr.bf16.mxu0 %v2159_v1  ;;  %1687 = vmatprep.subr.bf16.mxu1 %v2165_v11 }
 0x248   :  { %1657 = vmatpush1.bf16.msra.mxu0 %v2168_v16  ;;  %1689 = vmatpush1.bf16.msra.mxu1 %v2183_v27 }
 0x249   :  { %1659 = vmatprep.subr.bf16.mxu0 %v2180_v23  ;;  %1691 = vmatprep.subr.bf16.mxu1 %v2186_v31 }
 0x24c   :  { %1661 = vmatpush1.bf16.msra.mxu0 %v2189_v36  ;;  %1693 = vmatpush1.bf16.msra.mxu1 %v2195_v44 }
 0x24d   :  { %1663 = vmatprep.subr.bf16.mxu0 %v2192_v40  ;;  %1695 = vmatprep.subr.bf16.mxu1 %v2198_v45 }
 0x250   :  { %1665 = vmatpush1.bf16.msra.mxu0 %v2201_v50  ;;  %1697 = vmatpush1.bf16.msra.mxu1 %v2208_v53 }
 0x251   :  { %1699 = vmatprep.subr.bf16.mxu0 %v2105_v4  ;;  %1731 = vmatprep.subr.bf16.mxu1 %v2112_v13 }
 0x306   :  { %v503_v7 = vpop.f32.mrb[4].mxu0  ;;  %v574_v6 = vpop.f32.mrb[4].mxu1 }
 0x307   :  { %v504_v12 = vadd.f32 %v1418_v62, %v503_v7  ;;  %v505_v14 = vpop.f32.mrb[5].mxu0  ;;  %v576_v15 = vpop.f32.mrb[5].mxu1  ;;  %v575_v20 = vadd.f32 %v1420_v10, %v574_v6 }
 0x308   :  { %v506_v19 = vadd.f32 %v1419_v3, %v505_v14  ;;  %v577_v24 = vadd.f32 %v1421_v21, %v576_v15  ;;  %v1425_v14 = vld [vmem:[%s2578_s0 + $0x98] sm:$0xff] }
 0x309   :  { %1988 = vtanh.f32 %v504_v12 }
 0x30a   :  { %1990 = vtanh.f32 %v506_v19 }
 0x30b   :  { %1992 = vtanh.f32 %v575_v20 }
 0x30c   :  { %1994 = vtanh.f32 %v577_v24 }
 0x313   :  { %v1989_v25 = vpop.eup %1988 }
 0x314   :  { %v583_v28 = vmul.f32 0.5, %v1989_v25  ;;  %v1991_v29 = vpop.eup %1990 }
 0x315   :  { %v584_v33 = vmul.f32 0.5, %v1991_v29  ;;  %v1993_v37 = vpop.eup %1992 }
 0x316   :  { %v586_v32 = vadd.f32 0.5, %v583_v28  ;;  %v1995_v48 = vpop.eup %1994 }
 0x317   :  { %v587_v39 = vadd.f32 0.5, %v584_v33  ;;  %v585_v52 = vmul.f32 0.5, %v1995_v48 }
 0x318   :  { %v590_v41 = vmul.f32 %v1993_v37, %v586_v32 }
 0x319   :  { %v589_v43 = vmul.f32 %v587_v39, %v2315_v56  ;;  %v588_v54 = vadd.f32 0.5, %v585_v52  ;;  %v1422_v56 = vld [vmem:[%s2578_s0 + $0x80] sm:$0xff] }
 0x31b   :  { %v2365_v47 = vadd.f32 %v590_v41, %v589_v43 }
 0x31d   :  { %1996 = vtanh.f32 %v2365_v47 }
 0x327   :  { %v1997_v57 = vpop.eup %1996 }
 0x328   :  { %v593_v59 = vmul.f32 %v1997_v57, %v588_v54  ;;  %v1427_v54 = vld [vmem:[%s2578_s0 + $0xa8] sm:$0xff] }
 0x32a   :  { %664 = vmatmul.mubr.f32.vlgmr.msra.gmra.mrb[6].mxu0 %v593_v59  ;;  %735 = vmatmul.mubr.f32.vlgmr.msra.gmra.mrb[6].mxu1 %v593_v59  ;;  %v1428_v59 = vld [vmem:[%s2578_s0 + $0xb0] sm:$0xff] }
 0x32b   :  { %1701 = vmatpush1.bf16.msra.mxu0 %v2107_v8  ;;  %1733 = vmatpush1.bf16.msra.mxu1 %v2117_v18 }
 0x32c   :  { %1703 = vmatprep.subr.bf16.mxu0 %v2109_v9  ;;  %1735 = vmatprep.subr.bf16.mxu1 %v2124_v26 }
 0x32d   :  { %825 = vmatprep.mubr.f32.mxu0 %v2075_v0  ;;  %896 = vmatprep.mubr.f32.mxu1 %v2075_v0 }
 0x32f   :  { %1705 = vmatpush1.bf16.msra.mxu0 %v2115_v17  ;;  %1737 = vmatpush1.bf16.msra.mxu1 %v2126_v30 }
 0x330   :  { %1707 = vmatprep.subr.bf16.mxu0 %v2121_v22  ;;  %1739 = vmatprep.subr.bf16.mxu1 %v2132_v35 }
 0x333   :  { %1709 = vmatpush1.bf16.msra.mxu0 %v2130_v34  ;;  %1741 = vmatpush1.bf16.msra.mxu1 %v2138_v42 }
 0x334   :  { %1711 = vmatprep.subr.bf16.mxu0 %v2135_v38  ;;  %1743 = vmatprep.subr.bf16.mxu1 %v2141_v46 }
 0x337   :  { %1713 = vmatpush1.bf16.msra.mxu0 %v2144_v49  ;;  %1745 = vmatpush1.bf16.msra.mxu1 %v2150_v55 }
 0x338   :  { %1715 = vmatprep.subr.bf16.mxu0 %v2147_v51  ;;  %1747 = vmatprep.subr.bf16.mxu1 %v2153_v58 }
 0x33b   :  { %1717 = vmatpush1.bf16.msra.mxu0 %v2156_v61  ;;  %1749 = vmatpush1.bf16.msra.mxu1 %v2162_v5 }
 0x33c   :  { %1719 = vmatprep.subr.bf16.mxu0 %v2159_v1  ;;  %1751 = vmatprep.subr.bf16.mxu1 %v2165_v11 }
 0x33f   :  { %1721 = vmatpush1.bf16.msra.mxu0 %v2168_v16  ;;  %1753 = vmatpush1.bf16.msra.mxu1 %v2183_v27 }
 0x340   :  { %1723 = vmatprep.subr.bf16.mxu0 %v2180_v23  ;;  %1755 = vmatprep.subr.bf16.mxu1 %v2186_v31 }
 0x343   :  { %1725 = vmatpush1.bf16.msra.mxu0 %v2189_v36  ;;  %1757 = vmatpush1.bf16.msra.mxu1 %v2195_v44 }
 0x344   :  { %1727 = vmatprep.subr.bf16.mxu0 %v2192_v40  ;;  %1759 = vmatprep.subr.bf16.mxu1 %v2198_v45 }
 0x347   :  { %1729 = vmatpush1.bf16.msra.mxu0 %v2201_v50  ;;  %1761 = vmatpush1.bf16.msra.mxu1 %v2208_v53 }
 0x348   :  { %1763 = vmatprep.subr.bf16.mxu0 %v2105_v4  ;;  %1795 = vmatprep.subr.bf16.mxu1 %v2112_v13 }
 0x3fd   :  { %v665_v63 = vpop.f32.mrb[6].mxu0  ;;  %v736_v62 = vpop.f32.mrb[6].mxu1 }
 0x3fe   :  { %v666_v3 = vadd.f32 %v1422_v56, %v665_v63  ;;  %v667_v7 = vpop.f32.mrb[7].mxu0  ;;  %v738_v10 = vpop.f32.mrb[7].mxu1  ;;  %v737_v12 = vadd.f32 %v1424_v2, %v736_v62 }
 0x3ff   :  { %v668_v6 = vadd.f32 %v1423_v60, %v667_v7  ;;  %v739_v15 = vadd.f32 %v1425_v14, %v738_v10  ;;  %v1429_v7 = vld [vmem:[%s2578_s0 + $0xb8] sm:$0xff] }
 0x400   :  { %1998 = vtanh.f32 %v666_v3 }
 0x401   :  { %2000 = vtanh.f32 %v668_v6 }
 0x402   :  { %2002 = vtanh.f32 %v737_v12 }
 0x403   :  { %2004 = vtanh.f32 %v739_v15 }
 0x40a   :  { %v1999_v19 = vpop.eup %1998 }
 0x40b   :  { %v745_v20 = vmul.f32 0.5, %v1999_v19  ;;  %v2001_v21 = vpop.eup %2000 }
 0x40c   :  { %v746_v25 = vmul.f32 0.5, %v2001_v21  ;;  %v2003_v28 = vpop.eup %2002 }
 0x40d   :  { %v748_v24 = vadd.f32 0.5, %v745_v20  ;;  %v2005_v39 = vpop.eup %2004 }
 0x40e   :  { %v749_v29 = vadd.f32 0.5, %v746_v25  ;;  %v747_v41 = vmul.f32 0.5, %v2005_v39 }
 0x40f   :  { %v752_v32 = vmul.f32 %v2003_v28, %v748_v24 }
 0x410   :  { %v751_v33 = vmul.f32 %v749_v29, %v2365_v47  ;;  %v750_v43 = vadd.f32 0.5, %v747_v41  ;;  %v1426_v47 = vld [vmem:[%s2578_s0 + $0xa0] sm:$0xff] }
 0x412   :  { %v2415_v37 = vadd.f32 %v752_v32, %v751_v33 }
 0x414   :  { %2006 = vtanh.f32 %v2415_v37 }
 0x41e   :  { %v2007_v48 = vpop.eup %2006 }
 0x41f   :  { %v755_v52 = vmul.f32 %v2007_v48, %v750_v43  ;;  %v1431_v43 = vld [vmem:[%s2578_s0 + $0xc8] sm:$0xff] }
 0x421   :  { %826 = vmatmul.mubr.f32.vlgmr.msra.gmra.mrb[8].mxu0 %v755_v52  ;;  %897 = vmatmul.mubr.f32.vlgmr.msra.gmra.mrb[8].mxu1 %v755_v52  ;;  %v1432_v52 = vld [vmem:[%s2578_s0 + $0xd0] sm:$0xff] }
 0x422   :  { %1765 = vmatpush1.bf16.msra.mxu0 %v2107_v8  ;;  %1797 = vmatpush1.bf16.msra.mxu1 %v2117_v18 }
 0x423   :  { %1767 = vmatprep.subr.bf16.mxu0 %v2109_v9  ;;  %1799 = vmatprep.subr.bf16.mxu1 %v2124_v26 }
 0x424   :  { %987 = vmatprep.mubr.f32.mxu0 %v2075_v0  ;;  %1058 = vmatprep.mubr.f32.mxu1 %v2075_v0 }
 0x426   :  { %1769 = vmatpush1.bf16.msra.mxu0 %v2115_v17  ;;  %1801 = vmatpush1.bf16.msra.mxu1 %v2126_v30 }
 0x427   :  { %1771 = vmatprep.subr.bf16.mxu0 %v2121_v22  ;;  %1803 = vmatprep.subr.bf16.mxu1 %v2132_v35 }
 0x42a   :  { %1773 = vmatpush1.bf16.msra.mxu0 %v2130_v34  ;;  %1805 = vmatpush1.bf16.msra.mxu1 %v2138_v42 }
 0x42b   :  { %1775 = vmatprep.subr.bf16.mxu0 %v2135_v38  ;;  %1807 = vmatprep.subr.bf16.mxu1 %v2141_v46 }
 0x42e   :  { %1777 = vmatpush1.bf16.msra.mxu0 %v2144_v49  ;;  %1809 = vmatpush1.bf16.msra.mxu1 %v2150_v55 }
 0x42f   :  { %1779 = vmatprep.subr.bf16.mxu0 %v2147_v51  ;;  %1811 = vmatprep.subr.bf16.mxu1 %v2153_v58 }
 0x432   :  { %1781 = vmatpush1.bf16.msra.mxu0 %v2156_v61  ;;  %1813 = vmatpush1.bf16.msra.mxu1 %v2162_v5 }
 0x433   :  { %1783 = vmatprep.subr.bf16.mxu0 %v2159_v1  ;;  %1815 = vmatprep.subr.bf16.mxu1 %v2165_v11 }
 0x436   :  { %1785 = vmatpush1.bf16.msra.mxu0 %v2168_v16  ;;  %1817 = vmatpush1.bf16.msra.mxu1 %v2183_v27 }
 0x437   :  { %1787 = vmatprep.subr.bf16.mxu0 %v2180_v23  ;;  %1819 = vmatprep.subr.bf16.mxu1 %v2186_v31 }
 0x43a   :  { %1789 = vmatpush1.bf16.msra.mxu0 %v2189_v36  ;;  %1821 = vmatpush1.bf16.msra.mxu1 %v2195_v44 }
 0x43b   :  { %1791 = vmatprep.subr.bf16.mxu0 %v2192_v40  ;;  %1823 = vmatprep.subr.bf16.mxu1 %v2198_v45 }
 0x43e   :  { %1793 = vmatpush1.bf16.msra.mxu0 %v2201_v50  ;;  %1825 = vmatpush1.bf16.msra.mxu1 %v2208_v53 }
 0x43f   :  { %1827 = vmatprep.subr.bf16.mxu0 %v2105_v4  ;;  %1859 = vmatprep.subr.bf16.mxu1 %v2112_v13 }
 0x4f4   :  { %v827_v57 = vpop.f32.mrb[8].mxu0  ;;  %v898_v56 = vpop.f32.mrb[8].mxu1 }
 0x4f5   :  { %v828_v60 = vadd.f32 %v1426_v47, %v827_v57  ;;  %v829_v63 = vpop.f32.mrb[9].mxu0  ;;  %v900_v2 = vpop.f32.mrb[9].mxu1  ;;  %v899_v3 = vadd.f32 %v1428_v59, %v898_v56  ;;  %v1433_v56 = vld [vmem:[%s2578_s0 + $0xd8] sm:$0xff] }
 0x4f6   :  { %v830_v62 = vadd.f32 %v1427_v54, %v829_v63  ;;  %v901_v10 = vadd.f32 %v1429_v7, %v900_v2 }
 0x4f7   :  { %2008 = vtanh.f32 %v828_v60 }
 0x4f8   :  { %2010 = vtanh.f32 %v830_v62 }
 0x4f9   :  { %2012 = vtanh.f32 %v899_v3 }
 0x4fa   :  { %2014 = vtanh.f32 %v901_v10 }
 0x501   :  { %v2009_v6 = vpop.eup %2008 }
 0x502   :  { %v907_v12 = vmul.f32 0.5, %v2009_v6  ;;  %v2011_v14 = vpop.eup %2010 }
 0x503   :  { %v908_v19 = vmul.f32 0.5, %v2011_v14  ;;  %v2013_v20 = vpop.eup %2012 }
 0x504   :  { %v910_v15 = vadd.f32 0.5, %v907_v12  ;;  %v2015_v29 = vpop.eup %2014 }
 0x505   :  { %v911_v21 = vadd.f32 0.5, %v908_v19  ;;  %v909_v32 = vmul.f32 0.5, %v2015_v29 }
 0x506   :  { %v914_v24 = vmul.f32 %v2013_v20, %v910_v15 }
 0x507   :  { %v913_v25 = vmul.f32 %v911_v21, %v2415_v37  ;;  %v912_v33 = vadd.f32 0.5, %v909_v32  ;;  %v1430_v37 = vld [vmem:[%s2578_s0 + $0xc0] sm:$0xff] }
 0x509   :  { %v2465_v28 = vadd.f32 %v914_v24, %v913_v25 }
 0x50b   :  { %2016 = vtanh.f32 %v2465_v28 }
 0x515   :  { %v2017_v39 = vpop.eup %2016 }
 0x516   :  { %v917_v41 = vmul.f32 %v2017_v39, %v912_v33 }
 0x518   :  { %988 = vmatmul.mubr.f32.vlgmr.msra.gmra.mrb[10].mxu0 %v917_v41  ;;  %1059 = vmatmul.mubr.f32.vlgmr.msra.gmra.mrb[10].mxu1 %v917_v41 }
 0x519   :  { %1829 = vmatpush1.bf16.msra.mxu0 %v2107_v8  ;;  %1861 = vmatpush1.bf16.msra.mxu1 %v2117_v18 }
 0x51a   :  { %1831 = vmatprep.subr.bf16.mxu0 %v2109_v9  ;;  %1863 = vmatprep.subr.bf16.mxu1 %v2124_v26 }
 0x51b   :  { %1149 = vmatprep.mubr.f32.mxu0 %v2075_v0  ;;  %1220 = vmatprep.mubr.f32.mxu1 %v2075_v0 }
 0x51d   :  { %1833 = vmatpush1.bf16.msra.mxu0 %v2115_v17  ;;  %1865 = vmatpush1.bf16.msra.mxu1 %v2126_v30 }
 0x51e   :  { %1835 = vmatprep.subr.bf16.mxu0 %v2121_v22  ;;  %1867 = vmatprep.subr.bf16.mxu1 %v2132_v35 }
 0x521   :  { %1837 = vmatpush1.bf16.msra.mxu0 %v2130_v34  ;;  %1869 = vmatpush1.bf16.msra.mxu1 %v2138_v42 }
 0x522   :  { %1839 = vmatprep.subr.bf16.mxu0 %v2135_v38  ;;  %1871 = vmatprep.subr.bf16.mxu1 %v2141_v46 }
 0x525   :  { %1841 = vmatpush1.bf16.msra.mxu0 %v2144_v49  ;;  %1873 = vmatpush1.bf16.msra.mxu1 %v2150_v55 }
 0x526   :  { %1843 = vmatprep.subr.bf16.mxu0 %v2147_v51  ;;  %1875 = vmatprep.subr.bf16.mxu1 %v2153_v58 }
 0x529   :  { %1845 = vmatpush1.bf16.msra.mxu0 %v2156_v61  ;;  %1877 = vmatpush1.bf16.msra.mxu1 %v2162_v5 }
 0x52a   :  { %1847 = vmatprep.subr.bf16.mxu0 %v2159_v1  ;;  %1879 = vmatprep.subr.bf16.mxu1 %v2165_v11 }
 0x52d   :  { %1849 = vmatpush1.bf16.msra.mxu0 %v2168_v16  ;;  %1881 = vmatpush1.bf16.msra.mxu1 %v2183_v27 }
 0x52e   :  { %1851 = vmatprep.subr.bf16.mxu0 %v2180_v23  ;;  %1883 = vmatprep.subr.bf16.mxu1 %v2186_v31 }
 0x531   :  { %1853 = vmatpush1.bf16.msra.mxu0 %v2189_v36  ;;  %1885 = vmatpush1.bf16.msra.mxu1 %v2195_v44 }
 0x532   :  { %1855 = vmatprep.subr.bf16.mxu0 %v2192_v40  ;;  %1887 = vmatprep.subr.bf16.mxu1 %v2198_v45 }
 0x535   :  { %1857 = vmatpush1.bf16.msra.mxu0 %v2201_v50  ;;  %1889 = vmatpush1.bf16.msra.mxu1 %v2208_v53 }
 0x536   :  { %1891 = vmatprep.subr.bf16.mxu0 %v2105_v4  ;;  %1923 = vmatprep.subr.bf16.mxu1 %v2112_v13 }
 0x5eb   :  { %v989_v48 = vpop.f32.mrb[10].mxu0  ;;  %v1060_v47 = vpop.f32.mrb[10].mxu1 }
 0x5ec   :  { %v990_v54 = vadd.f32 %v1430_v37, %v989_v48  ;;  %v991_v57 = vpop.f32.mrb[11].mxu0  ;;  %v1062_v59 = vpop.f32.mrb[11].mxu1  ;;  %v1061_v13 = vadd.f32 %v1432_v52, %v1060_v47  ;;  %v1441_v37 = vld [vmem:[%s2578_s0 + $0x118] sm:$0xff] }
 0x5ed   :  { %v992_v4 = vadd.f32 %v1431_v43, %v991_v57  ;;  %v1063_v60 = vadd.f32 %v1433_v56, %v1062_v59 }
 0x5ee   :  { %2018 = vtanh.f32 %v990_v54 }
 0x5ef   :  { %2020 = vtanh.f32 %v992_v4 }
 0x5f0   :  { %2022 = vtanh.f32 %v1061_v13 }
 0x5f1   :  { %2024 = vtanh.f32 %v1063_v60 }
 0x5f8   :  { %v2019_v63 = vpop.eup %2018 }
 0x5f9   :  { %v1069_v2 = vmul.f32 0.5, %v2019_v63  ;;  %v2021_v62 = vpop.eup %2020 }
 0x5fa   :  { %v1070_v7 = vmul.f32 0.5, %v2021_v62  ;;  %v2023_v10 = vpop.eup %2022 }
 0x5fb   :  { %v1072_v3 = vadd.f32 0.5, %v1069_v2  ;;  %v2025_v19 = vpop.eup %2024 }
 0x5fc   :  { %v1073_v6 = vadd.f32 0.5, %v1070_v7  ;;  %v1071_v20 = vmul.f32 0.5, %v2025_v19 }
 0x5fd   :  { %v1076_v12 = vmul.f32 %v2023_v10, %v1072_v3 }
 0x5fe   :  { %v1075_v14 = vmul.f32 %v1073_v6, %v2465_v28  ;;  %v1074_v21 = vadd.f32 0.5, %v1071_v20 }
 0x600   :  { %v2515_v15 = vadd.f32 %v1076_v12, %v1075_v14 }
 0x602   :  { %2026 = vtanh.f32 %v2515_v15 }
 0x60c   :  { %v2027_v24 = vpop.eup %2026 }
 0x60d   :  { %v1079_v25 = vmul.f32 %v2027_v24, %v1074_v21 }
 0x60f   :  { %1150 = vmatmul.mubr.f32.vlgmr.msra.gmra.mrb[12].mxu0 %v1079_v25  ;;  %1221 = vmatmul.mubr.f32.vlgmr.msra.gmra.mrb[12].mxu1 %v1079_v25 }
 0x610   :  { %1893 = vmatpush1.bf16.msra.mxu0 %v2107_v8  ;;  %1925 = vmatpush1.bf16.msra.mxu1 %v2117_v18  ;;  %v1435_v8 = vld [vmem:[%s2578_s0 + $0xe8] sm:$0xff] }
 0x611   :  { %1895 = vmatprep.subr.bf16.mxu0 %v2109_v9  ;;  %1927 = vmatprep.subr.bf16.mxu1 %v2124_v26 }
 0x612   :  { %1311 = vmatprep.mubr.f32.mxu0 %v2075_v0  ;;  %1382 = vmatprep.mubr.f32.mxu1 %v2075_v0  ;;  %v1434_v0 = vld [vmem:[%s2578_s0 + $0xe0] sm:$0xff] }
 0x614   :  { %1897 = vmatpush1.bf16.msra.mxu0 %v2115_v17  ;;  %1929 = vmatpush1.bf16.msra.mxu1 %v2126_v30  ;;  %v1436_v17 = vld [vmem:[%s2578_s0 + $0xf0] sm:$0xff] }
 0x615   :  { %1899 = vmatprep.subr.bf16.mxu0 %v2121_v22  ;;  %1931 = vmatprep.subr.bf16.mxu1 %v2132_v35 }
 0x618   :  { %1901 = vmatpush1.bf16.msra.mxu0 %v2130_v34  ;;  %1933 = vmatpush1.bf16.msra.mxu1 %v2138_v42 }
 0x619   :  { %1903 = vmatprep.subr.bf16.mxu0 %v2135_v38  ;;  %1935 = vmatprep.subr.bf16.mxu1 %v2141_v46  ;;  %v1437_v38 = vld [vmem:[%s2578_s0 + $0xf8] sm:$0xff] }
 0x61c   :  { %1905 = vmatpush1.bf16.msra.mxu0 %v2144_v49  ;;  %1937 = vmatpush1.bf16.msra.mxu1 %v2150_v55 }
 0x61d   :  { %1907 = vmatprep.subr.bf16.mxu0 %v2147_v51  ;;  %1939 = vmatprep.subr.bf16.mxu1 %v2153_v58 }
 0x620   :  { %1909 = vmatpush1.bf16.msra.mxu0 %v2156_v61  ;;  %1941 = vmatpush1.bf16.msra.mxu1 %v2162_v5 }
 0x621   :  { %1911 = vmatprep.subr.bf16.mxu0 %v2159_v1  ;;  %1943 = vmatprep.subr.bf16.mxu1 %v2165_v11 }
 0x624   :  { %1913 = vmatpush1.bf16.msra.mxu0 %v2168_v16  ;;  %1945 = vmatpush1.bf16.msra.mxu1 %v2183_v27 }
 0x625   :  { %1915 = vmatprep.subr.bf16.mxu0 %v2180_v23  ;;  %1947 = vmatprep.subr.bf16.mxu1 %v2186_v31 }
 0x628   :  { %1917 = vmatpush1.bf16.msra.mxu0 %v2189_v36  ;;  %1949 = vmatpush1.bf16.msra.mxu1 %v2195_v44  ;;  %v1438_v44 = vld [vmem:[%s2578_s0 + $0x100] sm:$0xff] }
 0x629   :  { %1919 = vmatprep.subr.bf16.mxu0 %v2192_v40  ;;  %1951 = vmatprep.subr.bf16.mxu1 %v2198_v45  ;;  %v1439_v45 = vld [vmem:[%s2578_s0 + $0x108] sm:$0xff] }
 0x62c   :  { %1921 = vmatpush1.bf16.msra.mxu0 %v2201_v50  ;;  %1953 = vmatpush1.bf16.msra.mxu1 %v2208_v53  ;;  %v1440_v53 = vld [vmem:[%s2578_s0 + $0x110] sm:$0xff] }
 0x6e2   :  { %v1151_v9 = vpop.f32.mrb[12].mxu0  ;;  %v1222_v18 = vpop.f32.mrb[12].mxu1 }
 0x6e3   :  { %v1152_v22 = vadd.f32 %v1434_v0, %v1151_v9  ;;  %v1153_v26 = vpop.f32.mrb[13].mxu0  ;;  %v1224_v30 = vpop.f32.mrb[13].mxu1  ;;  %v1223_v35 = vadd.f32 %v1436_v17, %v1222_v18 }
 0x6e4   :  { %v1154_v34 = vadd.f32 %v1435_v8, %v1153_v26  ;;  %v1225_v42 = vadd.f32 %v1437_v38, %v1224_v30 }
 0x6e5   :  { %2028 = vtanh.f32 %v1152_v22 }
 0x6e6   :  { %2030 = vtanh.f32 %v1154_v34 }
 0x6e7   :  { %2032 = vtanh.f32 %v1223_v35 }
 0x6e8   :  { %2034 = vtanh.f32 %v1225_v42 }
 0x6ef   :  { %v2029_v46 = vpop.eup %2028 }
 0x6f0   :  { %v1231_v49 = vmul.f32 0.5, %v2029_v46  ;;  %v2031_v51 = vpop.eup %2030 }
 0x6f1   :  { %v1232_v58 = vmul.f32 0.5, %v2031_v51  ;;  %v2033_v61 = vpop.eup %2032 }
 0x6f2   :  { %v1234_v55 = vadd.f32 0.5, %v1231_v49  ;;  %v2035_v23 = vpop.eup %2034 }
 0x6f3   :  { %v1235_v1 = vadd.f32 0.5, %v1232_v58  ;;  %v1233_v27 = vmul.f32 0.5, %v2035_v23 }
 0x6f4   :  { %v1238_v5 = vmul.f32 %v2033_v61, %v1234_v55 }
 0x6f5   :  { %v1237_v11 = vmul.f32 %v1235_v1, %v2515_v15  ;;  %v1236_v31 = vadd.f32 0.5, %v1233_v27 }
 0x6f7   :  { %v1239_v16 = vadd.f32 %v1238_v5, %v1237_v11 }
 0x6f9   :  { %2036 = vtanh.f32 %v1239_v16 }
 0x703   :  { %v2037_v36 = vpop.eup %2036 }
 0x704   :  { %v1241_v40 = vmul.f32 %v2037_v36, %v1236_v31 }
 0x706   :  { %1312 = vmatmul.mubr.f32.vlgmr.msra.gmra.mrb[14].mxu0 %v1241_v40  ;;  %1383 = vmatmul.mubr.f32.vlgmr.msra.gmra.mrb[14].mxu1 %v1241_v40 }
 0x7d9   :  { %v1313_v50 = vpop.f32.mrb[14].mxu0  ;;  %v1384_v28 = vpop.f32.mrb[14].mxu1 }
 0x7da   :  { %v1314_v29 = vadd.f32 %v1438_v44, %v1313_v50  ;;  %v1315_v32 = vpop.f32.mrb[15].mxu0  ;;  %v1386_v33 = vpop.f32.mrb[15].mxu1  ;;  %v1385_v41 = vadd.f32 %v1440_v53, %v1384_v28 }
 0x7db   :  { %v1316_v39 = vadd.f32 %v1439_v45, %v1315_v32  ;;  %v1387_v43 = vadd.f32 %v1441_v37, %v1386_v33 }
 0x7dc   :  { %2038 = vtanh.f32 %v1314_v29 }
 0x7dd   :  { %2040 = vtanh.f32 %v1316_v39 }
 0x7de   :  { %2042 = vtanh.f32 %v1385_v41 }
 0x7df   :  { %2044 = vtanh.f32 %v1387_v43 }
 0x7e6   :  { %v2039_v48 = vpop.eup %2038 }
 0x7e7   :  { %v1393_v52 = vmul.f32 0.5, %v2039_v48  ;;  %v2041_v47 = vpop.eup %2040 }
 0x7e8   :  { %v1394_v57 = vmul.f32 0.5, %v2041_v47  ;;  %v2043_v59 = vpop.eup %2042 }
 0x7e9   :  { %v1396_v54 = vadd.f32 0.5, %v1393_v52  ;;  %v2045_v63 = vpop.eup %2044 }
 0x7ea   :  { %v1397_v4 = vadd.f32 0.5, %v1394_v57  ;;  %v1395_v2 = vmul.f32 0.5, %v2045_v63 }
 0x7eb   :  { %v1400_v13 = vmul.f32 %v2043_v59, %v1396_v54 }
 0x7ec   :  { %v1399_v56 = vmul.f32 %v1397_v4, %v1239_v16  ;;  %v1398_v62 = vadd.f32 0.5, %v1395_v2 }
 0x7ee   :  { %v1401_v60 = vadd.f32 %v1400_v13, %v1399_v56 }
 0x7f0   :  { %2046 = vtanh.f32 %v1401_v60 }
 0x7fa   :  { %v2047_v3 = vpop.eup %2046 }
 0x7fb   :  { %v1403_v7 = vmul.f32 %v2047_v3, %v1398_v62 }
 0x7fd   :  { %1404 = vst [vmem:[%s2580_s2] sm:$0xff] %v1403_v7 }
 0x7fe   :  { %1409 = vsyncpa [#allocation3], 1 }

</bundles_post_ra>
